<compile_context>
chip_gen: v7x
topology: tpu7x:2x2x1
jax: 0.10.0
libtpu: 0.0.40
codegen_flags: <defaults>
</compile_context>

<pallas_src>
import jax
import jax.numpy as jnp
from jax.experimental import pallas as pl
from jax.experimental.pallas import tpu as pltpu

OUT_LANES = 128          # lane-dense padded output width
MAX_TILE_M = 512         # rows per grid step (multiple of 8); 512 is at HBM roofline


def _leaky_relu(x, negative_slope=0.01):
    return jnp.where(x >= 0, x, negative_slope * x)


def generator_kernel(x_ref, w1_ref, b1_ref, w2_ref, b2_ref, w3_ref, b3_ref, o_ref):
    x = x_ref[...].astype(jnp.float32)

    # Layer 1: Linear(codings_size -> 16) + LeakyReLU(0.01)
    h1 = jnp.dot(x, w1_ref[...], preferred_element_type=jnp.float32) + b1_ref[...]
    h1 = _leaky_relu(h1)

    # Layer 2: Linear(16 -> 16) + LeakyReLU(0.01)
    h2 = jnp.dot(h1, w2_ref[...], preferred_element_type=jnp.float32) + b2_ref[...]
    h2 = _leaky_relu(h2)

    # Layer 3: Linear(16 -> 128-padded-output); only the first 2 columns are real,
    # the rest are zeros coming from the zero-padded W3/b3 (lane-dense store).
    out = jnp.dot(h2, w3_ref[...], preferred_element_type=jnp.float32) + b3_ref[...]

    o_ref[...] = out.astype(o_ref.dtype)


def generator_forward(x, params, *, max_tile_m=MAX_TILE_M):
    """x: [batch, codings_size] float32 -> [batch, 2] float32."""
    w1, b1, w2, b2, w3, b3 = params
    batch, codings = x.shape
    out_dim = w3.shape[1]

    # Zero-pad the last layer to a lane-dense 128-wide output.
    w3p = jnp.zeros((w3.shape[0], OUT_LANES), w3.dtype).at[:, :out_dim].set(w3)
    b3p = jnp.zeros((1, OUT_LANES), b3.dtype).at[:, :out_dim].set(b3)

    # Tile size: multiple of 8 (f32 sublane), capped at max_tile_m.
    tm = min(max_tile_m, max(8, ((batch + 7) // 8) * 8))
    # Pad batch to a multiple of the tile so every grid step is a full unmasked tile.
    padded_batch = ((batch + tm - 1) // tm) * tm
    if padded_batch != batch:
        x = jnp.pad(x, ((0, padded_batch - batch), (0, 0)))

    grid = (padded_batch // tm,)

    # Parameters: full-extent blocks, constant index_map -> stay pinned in VMEM.
    def param_spec(arr):
        return pl.BlockSpec(arr.shape, lambda i: tuple(0 for _ in arr.shape))

    out_padded = pl.pallas_call(
        generator_kernel,
        out_shape=jax.ShapeDtypeStruct((padded_batch, OUT_LANES), jnp.float32),
        grid_spec=pltpu.PrefetchScalarGridSpec(
            num_scalar_prefetch=0,
            grid=grid,
            in_specs=[
                pl.BlockSpec((tm, codings), lambda i: (i, 0)),   # x: tiled over batch
                param_spec(w1), param_spec(b1),
                param_spec(w2), param_spec(b2),
                param_spec(w3p), param_spec(b3p),
            ],
            out_specs=pl.BlockSpec((tm, OUT_LANES), lambda i: (i, 0)),
        ),
        compiler_params=pltpu.CompilerParams(
            dimension_semantics=("parallel",)),
    )(x, w1, b1, w2, b2, w3p, b3p)

    return out_padded[:batch, :out_dim]


def init_params(key, codings_size=10):
    """Deterministic init matching PyTorch nn.Linear default:
    U(-1/sqrt(fan_in), 1/sqrt(fan_in)) for both weights and biases."""
    dims = [(codings_size, 16), (16, 16), (16, 2)]
    params = []
    for (fan_in, fan_out) in dims:
        key, kw, kb = jax.random.split(key, 3)
        bound = 1.0 / jnp.sqrt(fan_in)
        w = jax.random.uniform(kw, (fan_in, fan_out), jnp.float32, -bound, bound)
        b = jax.random.uniform(kb, (1, fan_out), jnp.float32, -bound, bound)
        params.extend([w, b])
    return tuple(params)


def reference_forward(x, params):
    w1, b1, w2, b2, w3, b3 = params
    h1 = x @ w1 + b1
    h1 = jnp.where(h1 >= 0, h1, 0.01 * h1)
    h2 = h1 @ w2 + b2
    h2 = jnp.where(h2 >= 0, h2, 0.01 * h2)
    return h2 @ w3 + b3


if __name__ == "__main__":
    codings_size = 10

    key = jax.random.PRNGKey(0)
    key_p, key_x1, key_x2 = jax.random.split(key, 3)
    params = init_params(key_p, codings_size)

    # Small batch (multiple of 8).
    batch = 8
    x = jax.random.normal(key_x1, (batch, codings_size), jnp.float32)
    out = jax.block_until_ready(generator_forward(x, params))
    ref = reference_forward(x, params)
    assert out.shape == (batch, 2), out.shape
    assert jnp.allclose(out, ref, atol=1e-5, rtol=1e-5)

    # Ragged batch (exercises the pad-to-tile path).
    batch2 = 37
    x2 = jax.random.normal(key_x2, (batch2, codings_size), jnp.float32)
    out2 = jax.block_until_ready(generator_forward(x2, params))
    ref2 = reference_forward(x2, params)
    assert out2.shape == (batch2, 2), out2.shape
    assert jnp.allclose(out2, ref2, atol=1e-5, rtol=1e-5)

    print("KERNEL_OK")
</pallas_src>

<mosaic_0001>
module attributes {stable_mosaic.version = 11 : i64} {
  func.func @generator_kernel(%arg0: i32, %arg1: memref<8x10xf32, #tpu.memory_space<vmem>>, %arg2: memref<10x16xf32, #tpu.memory_space<vmem>>, %arg3: memref<1x16xf32, #tpu.memory_space<vmem>>, %arg4: memref<16x16xf32, #tpu.memory_space<vmem>>, %arg5: memref<1x16xf32, #tpu.memory_space<vmem>>, %arg6: memref<16x128xf32, #tpu.memory_space<vmem>>, %arg7: memref<1x128xf32, #tpu.memory_space<vmem>>, %arg8: memref<8x128xf32, #tpu.memory_space<vmem>>) attributes {dimension_semantics = [#tpu.dimension_semantics<parallel>], iteration_bounds = array<i64: 1>, scalar_prefetch = 0 : i64, scratch_operands = 0 : i64, tpu.core_type = #tpu.core_type<tc>, window_params = [{transform_indices = @transform_0, window_bounds = array<i64: 8, 10>}, {pipeline_mode = #tpu.pipeline_mode<synchronous>, transform_indices = @transform_1, window_bounds = array<i64: 10, 16>}, {pipeline_mode = #tpu.pipeline_mode<synchronous>, transform_indices = @transform_2, window_bounds = array<i64: 1, 16>}, {pipeline_mode = #tpu.pipeline_mode<synchronous>, transform_indices = @transform_3, window_bounds = array<i64: 16, 16>}, {pipeline_mode = #tpu.pipeline_mode<synchronous>, transform_indices = @transform_4, window_bounds = array<i64: 1, 16>}, {pipeline_mode = #tpu.pipeline_mode<synchronous>, transform_indices = @transform_5, window_bounds = array<i64: 16, 128>}, {pipeline_mode = #tpu.pipeline_mode<synchronous>, transform_indices = @transform_6, window_bounds = array<i64: 1, 128>}, {transform_indices = @transform_7, window_bounds = array<i64: 8, 128>}]} {
    %c0 = arith.constant 0 : index
    %c0_0 = arith.constant 0 : index
    %0 = vector.load %arg1[%c0, %c0_0] : memref<8x10xf32, #tpu.memory_space<vmem>>, vector<8x10xf32>
    %c0_1 = arith.constant 0 : index
    %c0_2 = arith.constant 0 : index
    %1 = vector.load %arg2[%c0_1, %c0_2] : memref<10x16xf32, #tpu.memory_space<vmem>>, vector<10x16xf32>
    %cst = arith.constant dense<0.000000e+00> : vector<8x16xf32>
    %2 = tpu.matmul %0, %1, %cst {dimension_numbers = #tpu.dot_dimension_numbers<[1], [0], [0], [1], [0, 0, 1, 1], [], []>} : vector<8x10xf32>, vector<10x16xf32>, vector<8x16xf32> -> vector<8x16xf32>
    %c0_3 = arith.constant 0 : index
    %c0_4 = arith.constant 0 : index
    %3 = vector.load %arg3[%c0_3, %c0_4] : memref<1x16xf32, #tpu.memory_space<vmem>>, vector<1x16xf32>
    %4 = vector.broadcast %3 : vector<1x16xf32> to vector<8x16xf32>
    %5 = arith.addf %2, %4 : vector<8x16xf32>
    %cst_5 = arith.constant 0.000000e+00 : f32
    %6 = vector.broadcast %cst_5 : f32 to vector<8x16xf32>
    %7 = arith.cmpf oge, %5, %6 : vector<8x16xf32>
    %cst_6 = arith.constant 0.00999999977 : f32
    %8 = vector.broadcast %cst_6 : f32 to vector<8x16xf32>
    %9 = arith.mulf %8, %5 : vector<8x16xf32>
    %10 = arith.select %7, %5, %9 : vector<8x16xi1>, vector<8x16xf32>
    %c0_7 = arith.constant 0 : index
    %c0_8 = arith.constant 0 : index
    %11 = vector.load %arg4[%c0_7, %c0_8] : memref<16x16xf32, #tpu.memory_space<vmem>>, vector<16x16xf32>
    %cst_9 = arith.constant dense<0.000000e+00> : vector<8x16xf32>
    %12 = tpu.matmul %10, %11, %cst_9 {dimension_numbers = #tpu.dot_dimension_numbers<[1], [0], [0], [1], [0, 0, 1, 1], [], []>} : vector<8x16xf32>, vector<16x16xf32>, vector<8x16xf32> -> vector<8x16xf32>
    %c0_10 = arith.constant 0 : index
    %c0_11 = arith.constant 0 : index
    %13 = vector.load %arg5[%c0_10, %c0_11] : memref<1x16xf32, #tpu.memory_space<vmem>>, vector<1x16xf32>
    %14 = vector.broadcast %13 : vector<1x16xf32> to vector<8x16xf32>
    %15 = arith.addf %12, %14 : vector<8x16xf32>
    %cst_12 = arith.constant 0.000000e+00 : f32
    %16 = vector.broadcast %cst_12 : f32 to vector<8x16xf32>
    %17 = arith.cmpf oge, %15, %16 : vector<8x16xf32>
    %cst_13 = arith.constant 0.00999999977 : f32
    %18 = vector.broadcast %cst_13 : f32 to vector<8x16xf32>
    %19 = arith.mulf %18, %15 : vector<8x16xf32>
    %20 = arith.select %17, %15, %19 : vector<8x16xi1>, vector<8x16xf32>
    %c0_14 = arith.constant 0 : index
    %c0_15 = arith.constant 0 : index
    %21 = vector.load %arg6[%c0_14, %c0_15] : memref<16x128xf32, #tpu.memory_space<vmem>>, vector<16x128xf32>
    %cst_16 = arith.constant dense<0.000000e+00> : vector<8x128xf32>
    %22 = tpu.matmul %20, %21, %cst_16 {dimension_numbers = #tpu.dot_dimension_numbers<[1], [0], [0], [1], [0, 0, 1, 1], [], []>} : vector<8x16xf32>, vector<16x128xf32>, vector<8x128xf32> -> vector<8x128xf32>
    %c0_17 = arith.constant 0 : index
    %c0_18 = arith.constant 0 : index
    %23 = vector.load %arg7[%c0_17, %c0_18] : memref<1x128xf32, #tpu.memory_space<vmem>>, vector<1x128xf32>
    %24 = vector.broadcast %23 : vector<1x128xf32> to vector<8x128xf32>
    %25 = arith.addf %22, %24 : vector<8x128xf32>
    %c0_19 = arith.constant 0 : index
    %c0_20 = arith.constant 0 : index
    %26 = vector.load %arg8[%c0_19, %c0_20] : memref<8x128xf32, #tpu.memory_space<vmem>>, vector<8x128xf32>
    tpu.vector_store %arg8[%c0_19, %c0_20], %25 {strides = array<i32>} : memref<8x128xf32, #tpu.memory_space<vmem>>, vector<8x128xf32>,
    return
  }
  func.func @transform_0(%arg0: i32) -> (i32, i32) {
    %c0_i32 = arith.constant 0 : i32
    %c0_i32_0 = arith.constant 0 : i32
    return %arg0, %c0_i32 : i32, i32
  }
  func.func @transform_1(%arg0: i32) -> (i32, i32) {
    %c0_i32 = arith.constant 0 : i32
    %c0_i32_0 = arith.constant 0 : i32
    %c0_i32_1 = arith.constant 0 : i32
    return %c0_i32, %c0_i32_0 : i32, i32
  }
  func.func @transform_2(%arg0: i32) -> (i32, i32) {
    %c0_i32 = arith.constant 0 : i32
    %c0_i32_0 = arith.constant 0 : i32
    %c0_i32_1 = arith.constant 0 : i32
    return %c0_i32, %c0_i32_0 : i32, i32
  }
  func.func @transform_3(%arg0: i32) -> (i32, i32) {
    %c0_i32 = arith.constant 0 : i32
    %c0_i32_0 = arith.constant 0 : i32
    %c0_i32_1 = arith.constant 0 : i32
    return %c0_i32, %c0_i32_0 : i32, i32
  }
  func.func @transform_4(%arg0: i32) -> (i32, i32) {
    %c0_i32 = arith.constant 0 : i32
    %c0_i32_0 = arith.constant 0 : i32
    %c0_i32_1 = arith.constant 0 : i32
    return %c0_i32, %c0_i32_0 : i32, i32
  }
  func.func @transform_5(%arg0: i32) -> (i32, i32) {
    %c0_i32 = arith.constant 0 : i32
    %c0_i32_0 = arith.constant 0 : i32
    %c0_i32_1 = arith.constant 0 : i32
    return %c0_i32, %c0_i32_0 : i32, i32
  }
  func.func @transform_6(%arg0: i32) -> (i32, i32) {
    %c0_i32 = arith.constant 0 : i32
    %c0_i32_0 = arith.constant 0 : i32
    %c0_i32_1 = arith.constant 0 : i32
    return %c0_i32, %c0_i32_0 : i32, i32
  }
  func.func @transform_7(%arg0: i32) -> (i32, i32) {
    %c0_i32 = arith.constant 0 : i32
    %c0_i32_0 = arith.constant 0 : i32
    return %arg0, %c0_i32 : i32, i32
  }
}

</mosaic_0001>

<bundles_post_ra>
// kernel: tpu_custom_call.1
= control target key start
LH: loop header
LB: loop body
LE: loop exit
PB: predicated region body
PF: predicated region fallthrough
CT: control target
= control target key end

     0   :  { %12 = vsyncpa [#allocation3], 0  ;;  %s612_s0 = inlined_call_operand.hbm [shape: f32[8,10], index: 0, kind: input, shape index: {}]   ;;  %s613_s1 = inlined_call_operand.hbm [shape: f32[10,16], index: 1, kind: input, shape index: {}]   ;;  %s614_s2 = inlined_call_operand.vmem [shape: f32[1,16], index: 2, kind: input, shape index: {}]   ;;  %s615_s3 = inlined_call_operand.hbm [shape: f32[16,16], index: 3, kind: input, shape index: {}]   ;;  %s616_s4 = inlined_call_operand.vmem [shape: f32[1,16], index: 4, kind: input, shape index: {}]   ;;  %s617_s5 = inlined_call_operand.vmem [shape: f32[16,128], index: 5, kind: input, shape index: {}]   ;;  %s618_s6 = inlined_call_operand.vmem [shape: f32[1,128], index: 6, kind: input, shape index: {}]   ;;  %s619_s7 = inlined_call_operand.hbm [shape: f32[8,128], index: 7, kind: output, shape index: {}]  }
   0x1   :  { %13 = vsyncpa [#allocation6], 0 }
   0x2   :  { %14 = vsyncpa [#allocation4], 0  ;;  %s493_s24 = smov [#allocation5]   ;;  %s399_s28 = scalar_lea.hbm %s613_s1, 256 }
   0x3   :  { %s30_s25 = sshll.u32 %s493_s24, 4  ;;  %p400_p0 = scmp.ne.s32.totalorder %s613_s1, %s399_s28  ;;  %s31_s25 = int_to_ptr.vmem [resolvable:$true] %s30_s25 }
   0x4   :  { %p403_p1 = scmp.lt.u32.totalorder %s399_s28, %s613_s1 }
   0x6   :  { %p405_p2 = pnand %p403_p1, %p400_p0 }
   0x8   :  { %408 = shalt.err (!%p405_p2)
}
   0x9   :  { %s409_s10 = scalar_lea.vmem %s31_s25, 256  ;;  %p414_p4 = scmp.lt.s32.totalorder %s31_s25, %s31_s25 }
   0xa   :  { %p410_p3 = scmp.ne.s32.totalorder %s31_s25, %s409_s10  ;;  %p415_p5 = scmp.lt.s32.totalorder %s409_s10, %s409_s10 }
   0xc   :  { %p416_p6 = por %p415_p5, %p414_p4 }
   0xe   :  { %p417_p7 = pnand %p416_p6, %p410_p3 }
  0x10   :  { %420 = shalt.err (!%p417_p7)
}
  0x11   :  { %s494_s11 = smov 128   ;;  %s495_s12 = smov 8  }
  0x12   :  { %36 = dma.hbm_to_vmem [thread:$0]  %s613_s1, 256, %s31_s25, [#allocation6], %s494_s11, %s494_s11, %s495_s12  }
  0x13   :  { %s496_s15 = smov [#allocation2]   ;;  %s497_s17 = smov [#allocation7]  }
  0x14   :  { %s21_s16 = sshll.u32 %s496_s15, 4  ;;  %s44_s18 = sshll.u32 %s497_s17, 4  ;;  %s22_s16 = int_to_ptr.vmem [resolvable:$true] %s21_s16  ;;  %s45_s18 = int_to_ptr.vmem [resolvable:$true] %s44_s18 }
  0x15   :  { %s421_s21 = scalar_lea.hbm %s612_s0, 128 }
  0x16   :  { %p422_p8 = scmp.ne.s32.totalorder %s612_s0, %s421_s21  ;;  %p425_p9 = scmp.lt.u32.totalorder %s421_s21, %s612_s0 }
  0x18   :  { %p427_p10 = pnand %p425_p9, %p422_p8 }
  0x1a   :  { %430 = shalt.err (!%p427_p10)
}
  0x1b   :  { %s431_s1 = scalar_lea.vmem %s22_s16, 128  ;;  %p436_p12 = scmp.lt.s32.totalorder %s22_s16, %s22_s16 }
  0x1c   :  { %p432_p11 = scmp.ne.s32.totalorder %s22_s16, %s431_s1  ;;  %p437_p13 = scmp.lt.s32.totalorder %s431_s1, %s431_s1 }
  0x1e   :  { %p438_p0 = por %p437_p13, %p436_p12 }
  0x20   :  { %p439_p1 = pnand %p438_p0, %p432_p11 }
  0x22   :  { %442 = shalt.err (!%p439_p1)
}
  0x23   :  { %24 = dma.hbm_to_vmem [thread:$0]  %s612_s0, 128, %s22_s16, [#allocation3]  }
  0x24   :  { %s443_s30 = scalar_lea.hbm %s615_s3, 256 }
  0x25   :  { %p444_p2 = scmp.ne.s32.totalorder %s615_s3, %s443_s30  ;;  %p447_p3 = scmp.lt.u32.totalorder %s443_s30, %s615_s3 }
  0x27   :  { %p449_p4 = pnand %p447_p3, %p444_p2 }
  0x29   :  { %452 = shalt.err (!%p449_p4)
}
  0x2a   :  { %s453_s14 = scalar_lea.vmem %s45_s18, 256  ;;  %p458_p6 = scmp.lt.s32.totalorder %s45_s18, %s45_s18 }
  0x2b   :  { %p454_p5 = scmp.ne.s32.totalorder %s45_s18, %s453_s14  ;;  %p459_p7 = scmp.lt.s32.totalorder %s453_s14, %s453_s14 }
  0x2d   :  { %p460_p8 = por %p459_p7, %p458_p6 }
  0x2f   :  { %p461_p9 = pnand %p460_p8, %p454_p5 }
  0x31   :  { %464 = shalt.err (!%p461_p9)
}
  0x32   :  { %50 = dma.hbm_to_vmem [thread:$0]  %s615_s3, 256, %s45_s18, [#allocation6], %s494_s11, %s494_s11, %s495_s12  }
  0x33   :  { %487 = dma.done.wait [#allocation3], 128  }
  0x34   :  { %488 = vsyncadd [#allocation3], 4294967168 }
  0x35   :  { %489 = dma.done.wait [#allocation6], 512  }
  0x36   :  { %490 = vsyncadd [#allocation6], 4294966784  ;;  %v498_v0 = vmov 0.0|0.0   ;;  %vm499_vm0 = vmmov 0   ;;  %v500_v1 = vmov 0.0   ;;  %vm80_vm1 = vcmask 1041408  }
  0x37   :  { %379 = vmatprep.subr.bf16.mxu0 %v498_v0  ;;  %383 = vmatprep.subr.bf16.mxu1 %v498_v0  ;;  %v67_v2 = vld [vmem:[#allocation5] sm:$0xff]  ;;  %v68_v3 = vld [vmem:[#allocation5 + $0x8] sm:$0x3]  ;;  %vm501_vm2 = vmmov 1   ;;  %v66_v5 = vld [vmem:[#allocation2] sm:$0xff]  ;;  %vm76_vm4 = vcmask 80896  }
  0x38   :  { %362 = vmatprep.mubr.msk.f32.mxu0 %vm499_vm0, %v500_v1  ;;  %369 = vmatprep.mubr.msk.f32.mxu1 %vm499_vm0, %v500_v1  ;;  %vm381_vm3 = vmpackc.low %vm80_vm1, %vm501_vm2  ;;  %v380_v4 = vpack.c.bf16 %v68_v3, %v67_v2  ;;  %v157_v6 = vld [vmem:[#allocation7] sm:$0xff]  ;;  %v158_v7 = vld [vmem:[#allocation7 + $0x8] sm:$0xff]  ;;  %vm166_vm6 = vcmask 130048   ;;  %s502_s22 = smov [#allocation8]  }
  0x39   :  { %v384_v8 = vpack.c.bf16 %v158_v7, %v157_v6  ;;  %v342_v9 = vld [vmem:[%s614_s2] ss:$0 sm:$0xff]  ;;  %v244_v16 = vld [vmem:[%s617_s5 + $0x8] sm:$0xff]  ;;  %s332_s23 = sshll.u32 %s502_s22, 4  ;;  %s333_s23 = int_to_ptr.vmem [resolvable:$true] %s332_s23 }
  0x3a   :  { %382 = vmatpush3.bf16.msk.msra.mxu0 %vm381_vm3, %v380_v4  ;;  %v243_v15 = vld [vmem:[%s617_s5] sm:$0xff]  ;;  %s465_s5 = scalar_lea.vmem %s333_s23, 128  ;;  %p470_p11 = scmp.lt.s32.totalorder %s333_s23, %s333_s23 }
  0x3b   :  { %386 = vmatprep.subr.bf16.mxu0 %v498_v0  ;;  %385 = vmatpush3.bf16.msra.mxu1 %v384_v8  ;;  %v387_v17 = vpack.c.bf16 %v244_v16, %v243_v15  ;;  %v345_v18 = vld [vmem:[%s616_s4] ss:$0 sm:$0xff]  ;;  %p466_p10 = scmp.ne.s32.totalorder %s333_s23, %s465_s5  ;;  %p471_p12 = scmp.lt.s32.totalorder %s465_s5, %s465_s5 }
  0x3c   :  { %v347_v24 = vld [vmem:[%s618_s6] ss:$0 sm:$0xff] }
  0x3d   :  { %363 = vmatmul.mubr.msk.f32.vlgmr.msra.gmra.mrb[0].mxu0 %vm76_vm4, %v66_v5  ;;  %p472_p13 = por %p471_p12, %p470_p11 }
  0x3e   :  { %376 = vmatprep.mubr.msk.f32.mxu0 %vm499_vm0, %v500_v1  ;;  %388 = vmatpush3.bf16.msra.mxu0 %v387_v17 }
  0x3f   :  { %p473_p0 = pnand %p472_p13, %p466_p10 }
 0x110   :  { %v150_v10 = vpop.f32.mrb[0].mxu0 }
 0x111   :  { %v151_v11 = vadd.f32 %v342_v9, %v150_v10  ;;  %v364_v12 = vpop.f32.mrb[1].mxu0 }
 0x113   :  { %vm154_vm5 = vcmp.ge.f32.partialorder %v151_v11, 0.0  ;;  %v155_v13 = vmul.f32 0.01, %v151_v11 }
 0x115   :  { %v156_v14 = vsel %vm154_vm5, %v151_v11, %v155_v13 }
 0x116   :  { %370 = vmatmul.mubr.msk.f32.vlgmr.msra.gmra.mrb[0].mxu1 %vm166_vm6, %v156_v14 }
 0x1e9   :  { %v236_v19 = vpop.f32.mrb[0].mxu1 }
 0x1ea   :  { %v237_v20 = vadd.f32 %v345_v18, %v236_v19  ;;  %v371_v21 = vpop.f32.mrb[1].mxu1 }
 0x1ec   :  { %vm240_vm7 = vcmp.ge.f32.partialorder %v237_v20, 0.0  ;;  %v241_v22 = vmul.f32 0.01, %v237_v20 }
 0x1ee   :  { %v242_v23 = vsel %vm240_vm7, %v237_v20, %v241_v22 }
 0x1ef   :  { %377 = vmatmul.mubr.msk.f32.vlgmr.msra.gmra.mrb[2].mxu0 %vm166_vm6, %v242_v23 }
 0x2c2   :  { %v321_v25 = vpop.f32.mrb[2].mxu0 }
 0x2c3   :  { %v322_v26 = vadd.f32 %v347_v24, %v321_v25  ;;  %v378_v27 = vpop.f32.mrb[3].mxu0 }
 0x2c5   :  { %325 = vst [vmem:[#allocation8] sm:$0xff] %v322_v26 }
 0x2c6   :  { %476 = shalt.err (!%p473_p0)
}
 0x2c7   :  { %s477_s26 = scalar_lea.hbm %s619_s7, 128 }
 0x2c8   :  { %p478_p1 = scmp.ne.s32.totalorder %s619_s7, %s477_s26  ;;  %p481_p2 = scmp.lt.u32.totalorder %s477_s26, %s619_s7 }
 0x2ca   :  { %p483_p3 = pnand %p481_p2, %p478_p1 }
 0x2cc   :  { %486 = shalt.err (!%p483_p3)
}
 0x2cd   :  { %335 = dma.vmem_to_hbm [thread:$0]  %s333_s23, 128, %s619_s7, [#allocation4]  }
 0x2ce   :  { %491 = dma.done.wait [#allocation4], 128  }
 0x2cf   :  { %492 = vsyncadd [#allocation4], 4294967168 }
 0x2d0   :  { %339 = vsyncpa [#allocation3], 1 }
 0x2d1   :  { %340 = vsyncpa [#allocation6], 1 }
 0x2d2   :  { %341 = vsyncpa [#allocation4], 1 }

</bundles_post_ra>
